<compile_context>
chip_gen: v6e
topology: v6e:2x2x1
jax: 0.10.0
libtpu: 0.0.40
codegen_flags: <defaults>
</compile_context>

<pallas_src>
import functools

import jax
import jax.numpy as jnp
from jax.experimental import pallas as pl
from jax.experimental.pallas import tpu as pltpu

H_SIZE = 256
BN_EPS = 1e-5
LEAKY_SLOPE = 0.01
LANE = 128
NEG_BIG = -1e30
TB_CAP = 2048          # max rows per batch tile
MIN_SPLIT_BATCH = 256  # below this, one tile; at/above, >=2 even tiles (v7x's 2 TCs)


def _round_up(x, m):
    return ((x + m - 1) // m) * m


def _cdiv(a, b):
    return -(-a // b)


def _actor_kernel(obs_ref, w1_ref, b1_ref, w2_ref, b2_ref, w3_ref, b3_ref, out_ref):
    # obs tile (TB, obs_size) bf16; BatchNorm is already folded into w1/b1.
    x = obs_ref[...]

    # Linear 1 (+ folded BN) + LeakyReLU. bf16 operands, f32 accumulation on the MXU.
    h = jnp.dot(x, w1_ref[...], preferred_element_type=jnp.float32) + b1_ref[...]
    h = jnp.maximum(h, LEAKY_SLOPE * h)

    # Linear 2 + LeakyReLU.
    h = jnp.dot(h.astype(jnp.bfloat16), w2_ref[...],
                preferred_element_type=jnp.float32) + b2_ref[...]
    h = jnp.maximum(h, LEAKY_SLOPE * h)

    # Linear 3 -> logits over the lane-dense (padded) action dim.
    # Padded columns have zero weights and a -1e30 bias, so they vanish under softmax.
    logits = jnp.dot(h.astype(jnp.bfloat16), w3_ref[...],
                     preferred_element_type=jnp.float32) + b3_ref[...]

    # softmax over dim=1 (padded action dim); divide via EUP approx reciprocal.
    m = jnp.max(logits, axis=1, keepdims=True)
    e = jnp.exp(logits - m)
    denom = jnp.sum(e, axis=1, keepdims=True)
    out_ref[...] = (e * pl.reciprocal(denom, approx=True)).astype(out_ref.dtype)


def prepare_actor_params(params):
    """One-time, obs-independent weight prep (hoisted out of the per-call jitted path)."""
    w1 = jnp.asarray(params["w1"], jnp.float32)                 # (obs, 256)
    b1 = jnp.asarray(params["b1"], jnp.float32).reshape(1, -1)
    w2 = jnp.asarray(params["w2"], jnp.float32)
    b2 = jnp.asarray(params["b2"], jnp.float32).reshape(1, -1)
    w3 = jnp.asarray(params["w3"], jnp.float32)
    b3 = jnp.asarray(params["b3"], jnp.float32).reshape(1, -1)
    action_size = w3.shape[1]

    # Lane-dense logits/output: pad the action dim up to a multiple of 128.
    n_out = _round_up(max(action_size, LANE), LANE)
    w3_pad = jnp.zeros((H_SIZE, n_out), jnp.bfloat16).at[:, :action_size].set(
        w3.astype(jnp.bfloat16))
    b3_pad = jnp.full((1, n_out), NEG_BIG, jnp.float32).at[:, :action_size].set(b3)

    prepped = {
        "w1": w1, "b1": b1,                                  # f32: BN folded per call
        "w2_bf": w2.astype(jnp.bfloat16), "b2": b2,
        "w3_pad": w3_pad, "b3_pad": b3_pad,
    }
    return prepped, action_size


@functools.partial(jax.jit, static_argnames=("action_size",))
def actor_network_linear_forward(obs, prepped, *, action_size):
    """obs: (batch, obs_size). prepped: output of prepare_actor_params."""
    obs = obs.astype(jnp.float32)
    batch, obs_size = obs.shape

    w1, b1 = prepped["w1"], prepped["b1"]

    # BatchNorm1d(affine=False), training-mode batch statistics over the FULL batch,
    # folded into linear-1:  xn @ w1 + b1 == x @ (scale*w1) + (b1 - (mean*scale) @ w1).
    mean = jnp.mean(obs, axis=0)
    var = jnp.mean(jnp.square(obs - mean[None, :]), axis=0)     # biased variance
    scale = jax.lax.rsqrt(var + BN_EPS)
    w1_bf = (w1 * scale[:, None]).astype(jnp.bfloat16)
    b1_fold = b1 - (mean * scale)[None, :] @ w1

    obs_bf = obs.astype(jnp.bfloat16)   # halves the obs DMA into the kernel

    w2_bf, b2 = prepped["w2_bf"], prepped["b2"]
    w3_pad, b3_pad = prepped["w3_pad"], prepped["b3_pad"]
    n_out = w3_pad.shape[1]

    # Batch tiling: evenly cover the batch with as few tiles as possible (cap 2048 rows),
    # but use an even number of >=2 tiles on larger batches so v7x's two TensorCores
    # both get balanced work.  The ragged final tile is masked by Pallas (no pad copy).
    if batch >= MIN_SPLIT_BATCH:
        n_tiles = _round_up(max(_cdiv(batch, TB_CAP), 2), 2)
    else:
        n_tiles = _cdiv(batch, TB_CAP)            # == 1 for small batches
    tb = _round_up(_cdiv(batch, n_tiles), 16)     # sublane-aligned for bf16 obs tiles
    if tb >= batch:
        tb = batch                                # tiny batch: one full-array block
    grid = (_cdiv(batch, tb),)

    def resident(shape):  # constant index_map -> block stays in VMEM across grid steps
        return pl.BlockSpec(shape, lambda i: (0, 0))

    out = pl.pallas_call(
        _actor_kernel,
        out_shape=jax.ShapeDtypeStruct((batch, n_out), jnp.float32),
        grid=grid,
        in_specs=[
            pl.BlockSpec((tb, obs_size), lambda i: (i, 0)),
            resident(w1_bf.shape), resident(b1_fold.shape),
            resident(w2_bf.shape), resident(b2.shape),
            resident(w3_pad.shape), resident(b3_pad.shape),
        ],
        out_specs=pl.BlockSpec((tb, n_out), lambda i: (i, 0)),
        compiler_params=pltpu.CompilerParams(
            # Batch tiles are independent -> shard across TensorCores on v7x.
            dimension_semantics=("parallel",),
            # Headroom for tb up to 2048 on v5e's 16 MiB default scoped VMEM; still well
            # under v7x's 64 MiB physical VMEM.
            vmem_limit_bytes=48 * 1024 * 1024,
        ),
    )(obs_bf, w1_bf, b1_fold, w2_bf, b2, w3_pad, b3_pad)

    return out[:, :action_size]


def init_params(key, obs_size, action_size):
    """Deterministic synthetic init mimicking nn.Linear (weights stored as (in, out))."""
    ks = jax.random.split(key, 6)

    def lin(kw, kb, fan_in, fan_out):
        bound = 1.0 / jnp.sqrt(jnp.float32(fan_in))
        w = jax.random.uniform(kw, (fan_in, fan_out), jnp.float32, -bound, bound)
        b = jax.random.uniform(kb, (1, fan_out), jnp.float32, -bound, bound)
        return w, b

    w1, b1 = lin(ks[0], ks[1], obs_size, H_SIZE)
    w2, b2 = lin(ks[2], ks[3], H_SIZE, H_SIZE)
    w3, b3 = lin(ks[4], ks[5], H_SIZE, action_size)
    return {"w1": w1, "b1": b1, "w2": w2, "b2": b2, "w3": w3, "b3": b3}


def reference_forward(obs, params):
    """Pure-JAX f32 reference mirroring the PyTorch module."""
    mean = jnp.mean(obs, axis=0, keepdims=True)
    var = jnp.mean(jnp.square(obs - mean), axis=0, keepdims=True)
    xn = (obs - mean) * jax.lax.rsqrt(var + BN_EPS)
    h = xn @ params["w1"] + params["b1"]
    h = jnp.where(h > 0, h, LEAKY_SLOPE * h)
    h = h @ params["w2"] + params["b2"]
    h = jnp.where(h > 0, h, LEAKY_SLOPE * h)
    logits = h @ params["w3"] + params["b3"]
    return jax.nn.softmax(logits, axis=1)


if __name__ == "__main__":
    obs_size = 32
    action_size = 16
    batch = 8

    key = jax.random.PRNGKey(0)
    k_obs, k_params = jax.random.split(key)
    observation = jax.random.normal(k_obs, (batch, obs_size), jnp.float32)
    params = init_params(k_params, obs_size, action_size)

    prepped, a_size = prepare_actor_params(params)
    out = actor_network_linear_forward(observation, prepped, action_size=a_size)
    out = jax.block_until_ready(out)

    assert out.shape == (batch, action_size)
    # softmax rows sum to ~1 (approx-reciprocal + bf16-matmul tolerance)
    assert jnp.allclose(jnp.sum(out, axis=1), 1.0, atol=5e-3)
    ref = reference_forward(observation, params)
    assert jnp.allclose(out, ref, atol=2e-2), float(jnp.max(jnp.abs(out - ref)))

    print("KERNEL_OK")
</pallas_src>

<mosaic_0001>
module attributes {stable_mosaic.version = 11 : i64} {
  func.func @_actor_kernel(%arg0: i32, %arg1: memref<8x32xbf16, #tpu.memory_space<vmem>>, %arg2: memref<32x256xbf16, #tpu.memory_space<vmem>>, %arg3: memref<1x256xf32, #tpu.memory_space<vmem>>, %arg4: memref<256x256xbf16, #tpu.memory_space<vmem>>, %arg5: memref<1x256xf32, #tpu.memory_space<vmem>>, %arg6: memref<256x128xbf16, #tpu.memory_space<vmem>>, %arg7: memref<1x128xf32, #tpu.memory_space<vmem>>, %arg8: memref<8x128xf32, #tpu.memory_space<vmem>>) attributes {dimension_semantics = [#tpu.dimension_semantics<parallel>], iteration_bounds = array<i64: 1>, scalar_prefetch = 0 : i64, scratch_operands = 0 : i64, tpu.core_type = #tpu.core_type<tc>, window_params = [{transform_indices = @transform_0, window_bounds = array<i64: 8, 32>}, {pipeline_mode = #tpu.pipeline_mode<synchronous>, transform_indices = @transform_1, window_bounds = array<i64: 32, 256>}, {pipeline_mode = #tpu.pipeline_mode<synchronous>, transform_indices = @transform_2, window_bounds = array<i64: 1, 256>}, {pipeline_mode = #tpu.pipeline_mode<synchronous>, transform_indices = @transform_3, window_bounds = array<i64: 256, 256>}, {pipeline_mode = #tpu.pipeline_mode<synchronous>, transform_indices = @transform_4, window_bounds = array<i64: 1, 256>}, {pipeline_mode = #tpu.pipeline_mode<synchronous>, transform_indices = @transform_5, window_bounds = array<i64: 256, 128>}, {pipeline_mode = #tpu.pipeline_mode<synchronous>, transform_indices = @transform_6, window_bounds = array<i64: 1, 128>}, {transform_indices = @transform_7, window_bounds = array<i64: 8, 128>}]} {
    %c0 = arith.constant 0 : index
    %c0_0 = arith.constant 0 : index
    %0 = vector.load %arg1[%c0, %c0_0] : memref<8x32xbf16, #tpu.memory_space<vmem>>, vector<8x32xbf16>
    %c0_1 = arith.constant 0 : index
    %c0_2 = arith.constant 0 : index
    %1 = vector.load %arg2[%c0_1, %c0_2] : memref<32x256xbf16, #tpu.memory_space<vmem>>, vector<32x256xbf16>
    %cst = arith.constant dense<0.000000e+00> : vector<8x256xf32>
    %2 = tpu.matmul %0, %1, %cst {dimension_numbers = #tpu.dot_dimension_numbers<[1], [0], [0], [1], [0, 0, 1, 1], [], []>} : vector<8x32xbf16>, vector<32x256xbf16>, vector<8x256xf32> -> vector<8x256xf32>
    %c0_3 = arith.constant 0 : index
    %c0_4 = arith.constant 0 : index
    %3 = vector.load %arg3[%c0_3, %c0_4] : memref<1x256xf32, #tpu.memory_space<vmem>>, vector<1x256xf32>
    %4 = vector.broadcast %3 : vector<1x256xf32> to vector<8x256xf32>
    %5 = arith.addf %2, %4 : vector<8x256xf32>
    %cst_5 = arith.constant 0.00999999977 : f32
    %6 = vector.broadcast %cst_5 : f32 to vector<8x256xf32>
    %7 = arith.mulf %6, %5 : vector<8x256xf32>
    %8 = arith.maximumf %5, %7 : vector<8x256xf32>
    %9 = arith.truncf %8 : vector<8x256xf32> to vector<8x256xbf16>
    %c0_6 = arith.constant 0 : index
    %c0_7 = arith.constant 0 : index
    %10 = vector.load %arg4[%c0_6, %c0_7] : memref<256x256xbf16, #tpu.memory_space<vmem>>, vector<256x256xbf16>
    %cst_8 = arith.constant dense<0.000000e+00> : vector<8x256xf32>
    %11 = tpu.matmul %9, %10, %cst_8 {dimension_numbers = #tpu.dot_dimension_numbers<[1], [0], [0], [1], [0, 0, 1, 1], [], []>} : vector<8x256xbf16>, vector<256x256xbf16>, vector<8x256xf32> -> vector<8x256xf32>
    %c0_9 = arith.constant 0 : index
    %c0_10 = arith.constant 0 : index
    %12 = vector.load %arg5[%c0_9, %c0_10] : memref<1x256xf32, #tpu.memory_space<vmem>>, vector<1x256xf32>
    %13 = vector.broadcast %12 : vector<1x256xf32> to vector<8x256xf32>
    %14 = arith.addf %11, %13 : vector<8x256xf32>
    %cst_11 = arith.constant 0.00999999977 : f32
    %15 = vector.broadcast %cst_11 : f32 to vector<8x256xf32>
    %16 = arith.mulf %15, %14 : vector<8x256xf32>
    %17 = arith.maximumf %14, %16 : vector<8x256xf32>
    %18 = arith.truncf %17 : vector<8x256xf32> to vector<8x256xbf16>
    %c0_12 = arith.constant 0 : index
    %c0_13 = arith.constant 0 : index
    %19 = vector.load %arg6[%c0_12, %c0_13] : memref<256x128xbf16, #tpu.memory_space<vmem>>, vector<256x128xbf16>
    %cst_14 = arith.constant dense<0.000000e+00> : vector<8x128xf32>
    %20 = tpu.matmul %18, %19, %cst_14 {dimension_numbers = #tpu.dot_dimension_numbers<[1], [0], [0], [1], [0, 0, 1, 1], [], []>} : vector<8x256xbf16>, vector<256x128xbf16>, vector<8x128xf32> -> vector<8x128xf32>
    %c0_15 = arith.constant 0 : index
    %c0_16 = arith.constant 0 : index
    %21 = vector.load %arg7[%c0_15, %c0_16] : memref<1x128xf32, #tpu.memory_space<vmem>>, vector<1x128xf32>
    %22 = vector.broadcast %21 : vector<1x128xf32> to vector<8x128xf32>
    %23 = arith.addf %20, %22 : vector<8x128xf32>
    %cst_17 = arith.constant dense<0xFF800000> : vector<8xf32>
    %24 = vector.multi_reduction <maximumf>, %23, %cst_17 [1] : vector<8x128xf32> to vector<8xf32>
    %25 = vector.shape_cast %24 : vector<8xf32> to vector<8x1xf32>
    %26 = vector.broadcast %25 : vector<8x1xf32> to vector<8x128xf32>
    %27 = arith.subf %23, %26 : vector<8x128xf32>
    %28 = math.exp %27 : vector<8x128xf32>
    %cst_18 = arith.constant dense<0.000000e+00> : vector<8xf32>
    %29 = vector.multi_reduction <add>, %28, %cst_18 [1] : vector<8x128xf32> to vector<8xf32>
    %30 = vector.shape_cast %29 : vector<8xf32> to vector<8x1xf32>
    %31 = tpu.reciprocal %30 {approx = true} : vector<8x1xf32> -> vector<8x1xf32>
    %32 = vector.broadcast %31 : vector<8x1xf32> to vector<8x128xf32>
    %33 = arith.mulf %28, %32 : vector<8x128xf32>
    %c0_19 = arith.constant 0 : index
    %c0_20 = arith.constant 0 : index
    %34 = vector.load %arg8[%c0_19, %c0_20] : memref<8x128xf32, #tpu.memory_space<vmem>>, vector<8x128xf32>
    tpu.vector_store %arg8[%c0_19, %c0_20], %33 {strides = array<i32>} : memref<8x128xf32, #tpu.memory_space<vmem>>, vector<8x128xf32>,
    return
  }
  func.func @transform_0(%arg0: i32) -> (i32, i32) {
    %c0_i32 = arith.constant 0 : i32
    %c0_i32_0 = arith.constant 0 : i32
    return %arg0, %c0_i32 : i32, i32
  }
  func.func @transform_1(%arg0: i32) -> (i32, i32) {
    %c0_i32 = arith.constant 0 : i32
    %c0_i32_0 = arith.constant 0 : i32
    %c0_i32_1 = arith.constant 0 : i32
    return %c0_i32, %c0_i32_0 : i32, i32
  }
  func.func @transform_2(%arg0: i32) -> (i32, i32) {
    %c0_i32 = arith.constant 0 : i32
    %c0_i32_0 = arith.constant 0 : i32
    %c0_i32_1 = arith.constant 0 : i32
    return %c0_i32, %c0_i32_0 : i32, i32
  }
  func.func @transform_3(%arg0: i32) -> (i32, i32) {
    %c0_i32 = arith.constant 0 : i32
    %c0_i32_0 = arith.constant 0 : i32
    %c0_i32_1 = arith.constant 0 : i32
    return %c0_i32, %c0_i32_0 : i32, i32
  }
  func.func @transform_4(%arg0: i32) -> (i32, i32) {
    %c0_i32 = arith.constant 0 : i32
    %c0_i32_0 = arith.constant 0 : i32
    %c0_i32_1 = arith.constant 0 : i32
    return %c0_i32, %c0_i32_0 : i32, i32
  }
  func.func @transform_5(%arg0: i32) -> (i32, i32) {
    %c0_i32 = arith.constant 0 : i32
    %c0_i32_0 = arith.constant 0 : i32
    %c0_i32_1 = arith.constant 0 : i32
    return %c0_i32, %c0_i32_0 : i32, i32
  }
  func.func @transform_6(%arg0: i32) -> (i32, i32) {
    %c0_i32 = arith.constant 0 : i32
    %c0_i32_0 = arith.constant 0 : i32
    %c0_i32_1 = arith.constant 0 : i32
    return %c0_i32, %c0_i32_0 : i32, i32
  }
  func.func @transform_7(%arg0: i32) -> (i32, i32) {
    %c0_i32 = arith.constant 0 : i32
    %c0_i32_0 = arith.constant 0 : i32
    return %arg0, %c0_i32 : i32, i32
  }
}

</mosaic_0001>

<bundles_post_ra>
// kernel: sub.9
= control target key start
LH: loop header
LB: loop body
LE: loop exit
PB: predicated region body
PF: predicated region fallthrough
CT: control target
= control target key end

     0   :  { %s56_s0 = inlined_call_operand.vmem [shape: f32[1,256], index: 0, kind: input, shape index: {}]   ;;  %s57_s1 = inlined_call_operand.vmem [shape: f32[1,256], index: 1, kind: input, shape index: {}]   ;;  %s58_s2 = inlined_call_operand.vmem [shape: f32[1,256], index: 2, kind: output, shape index: {}]  }
   0x1   :  { %v3_v0 = vld [vmem:[%s56_s0] sm:$0x1]  ;;  %v20_v2 = vld [vmem:[%s56_s0 + $0x1] sm:$0x1] }
   0x2   :  { %v4_v1 = vld [vmem:[%s57_s1] sm:$0x1]  ;;  %v21_v4 = vld [vmem:[%s57_s1 + $0x1] sm:$0x1] }
   0x3   :  { %v7_v3 = vsub.f32 %v3_v0, %v4_v1  ;;  %v16_v5 = vsub.f32 %v20_v2, %v21_v4 }
   0x5   :  { %9 = vst [vmem:[%s58_s2] sm:$0x1] %v7_v3  ;;  %22 = vst [vmem:[%s58_s2 + $0x1] sm:$0x1] %v16_v5 }

// kernel: actor_network_linear_forward.1
= control target key start
LH: loop header
LB: loop body
LE: loop exit
PB: predicated region body
PF: predicated region fallthrough
CT: control target
= control target key end

     0   :  { %12 = vsyncpa [#allocation3], 0  ;;  %s903_s0 = inlined_call_operand.vmem [shape: bf16[8,32], index: 0, kind: input, shape index: {}]   ;;  %s904_s1 = inlined_call_operand.vmem [shape: bf16[32,256], index: 1, kind: input, shape index: {}]   ;;  %s905_s2 = inlined_call_operand.vmem [shape: f32[1,256], index: 2, kind: input, shape index: {}]   ;;  %s906_s3 = inlined_call_operand.hbm [shape: bf16[256,256], index: 3, kind: input, shape index: {}]   ;;  %s907_s4 = inlined_call_operand.vmem [shape: f32[1,256], index: 4, kind: input, shape index: {}]   ;;  %s908_s5 = inlined_call_operand.vmem [shape: bf16[256,128], index: 5, kind: input, shape index: {}]   ;;  %s909_s6 = inlined_call_operand.vmem [shape: f32[1,128], index: 6, kind: input, shape index: {}]   ;;  %s910_s7 = inlined_call_operand.hbm [shape: f32[8,128], index: 7, kind: output, shape index: {}]  }
   0x1   :  { %13 = vsyncpa [#allocation4], 0  ;;  %s780_s24 = smov [#allocation2]  }
   0x2   :  { %s25_s25 = sshll.u32 %s780_s24, 4  ;;  %s26_s25 = int_to_ptr.vmem [resolvable:$true] %s25_s25 }
   0x3   :  { %s744_s26 = scalar_lea.vmem %s26_s25, 4096  ;;  %p749_p1 = scmp.lt.s32.totalorder %s26_s25, %s26_s25 }
   0x4   :  { %p745_p0 = scmp.ne.s32.totalorder %s26_s25, %s744_s26  ;;  %p750_p2 = scmp.lt.s32.totalorder %s744_s26, %s744_s26 }
   0x6   :  { %p751_p3 = por %p750_p2, %p749_p1 }
   0x8   :  { %p752_p4 = pnand %p751_p3, %p745_p0 }
   0xa   :  { %755 = shalt.err (!%p752_p4)
}
   0xb   :  { %s781_s27 = smov 128   ;;  %s782_s28 = smov 8  }
   0xc   :  { %31 = dma.hbm_to_vmem [thread:$0]  %s906_s3, 4096, %s26_s25, [#allocation3], %s781_s27, %s781_s27, %s782_s28  }
   0xd   :  { %776 = dma.done.wait [#allocation3], 4096  }
   0xe   :  { %777 = vsyncadd [#allocation3], 4294963200  ;;  %v783_v0 = vmov 0   ;;  %v662_v1 = vld [vmem:[%s904_s1 + $0x14] ss:$8 sps:$4 sm:$0xff]   ;;  %vm79_vm0 = vcmask 261120   ;;  %v49_v48 = vlaneseq }
   0xf   :  { %115 = vmatprep.mubr.bf16.mxu0 %v783_v0  ;;  %v664_v2 = vld [vmem:[%s904_s1 + $0x10] ss:$8 sps:$4 sm:$0xff]   ;;  %95 = vmatprep.subr.bf16.mxu0 %v662_v1  ;;  %v665_v3 = vld [vmem:[%s904_s1 + $0x4] ss:$8 sps:$4 sm:$0xff]   ;;  %v667_v4 = vld [vmem:[%s904_s1] ss:$8 sps:$4 sm:$0xff]  }
  0x10   :  { %96 = vmatpush1.bf16.msra.mxu0 %v664_v2  ;;  %v668_v5 = vld [vmem:[#allocation2 + $0x74] ss:$8 sps:$4 sm:$0xff]   ;;  %v670_v6 = vld [vmem:[#allocation2 + $0x70] ss:$8 sps:$4 sm:$0xff]   ;;  %v671_v7 = vld [vmem:[#allocation2 + $0x64] ss:$8 sps:$4 sm:$0xff]  }
  0x11   :  { %97 = vmatprep.subr.bf16.mxu0 %v665_v3  ;;  %334 = vmatprep.subr.bf16.mxu1 %v668_v5  ;;  %v42_v8 = vld [vmem:[%s903_s0] sm:$0xf]  ;;  %v674_v10 = vld [vmem:[#allocation2 + $0x54] ss:$8 sps:$4 sm:$0xff]   ;;  %v676_v11 = vld [vmem:[#allocation2 + $0x50] ss:$8 sps:$4 sm:$0xff]  }
  0x12   :  { %335 = vmatpush1.bf16.msra.mxu1 %v670_v6  ;;  %v673_v9 = vld [vmem:[#allocation2 + $0x60] ss:$8 sps:$4 sm:$0xff]   ;;  %v677_v12 = vld [vmem:[#allocation2 + $0x44] ss:$8 sps:$4 sm:$0xff]   ;;  %v680_v14 = vld [vmem:[#allocation2 + $0x34] ss:$8 sps:$4 sm:$0xff]  }
  0x13   :  { %336 = vmatprep.subr.bf16.mxu1 %v671_v7  ;;  %v679_v13 = vld [vmem:[#allocation2 + $0x40] ss:$8 sps:$4 sm:$0xff]   ;;  %v682_v15 = vld [vmem:[#allocation2 + $0x30] ss:$8 sps:$4 sm:$0xff]   ;;  %v683_v16 = vld [vmem:[#allocation2 + $0x24] ss:$8 sps:$4 sm:$0xff]  }
  0x14   :  { %98 = vmatpush1.bf16.msra.mxu0 %v667_v4  ;;  %v685_v17 = vld [vmem:[#allocation2 + $0x20] ss:$8 sps:$4 sm:$0xff]   ;;  %v686_v18 = vld [vmem:[#allocation2 + $0x14] ss:$8 sps:$4 sm:$0xff]   ;;  %v688_v19 = vld [vmem:[#allocation2 + $0x10] ss:$8 sps:$4 sm:$0xff]  }
  0x15   :  { %v689_v20 = vld [vmem:[#allocation2 + $0x4] ss:$8 sps:$4 sm:$0xff]   ;;  %v691_v21 = vld [vmem:[#allocation2] ss:$8 sps:$4 sm:$0xff]   ;;  %v692_v22 = vld [vmem:[#allocation2 + $0xf4] ss:$8 sps:$4 sm:$0xff]  }
  0x16   :  { %337 = vmatpush1.bf16.msra.mxu1 %v673_v9  ;;  %v694_v23 = vld [vmem:[#allocation2 + $0xf0] ss:$8 sps:$4 sm:$0xff]   ;;  %v695_v24 = vld [vmem:[#allocation2 + $0xe4] ss:$8 sps:$4 sm:$0xff]   ;;  %v697_v25 = vld [vmem:[#allocation2 + $0xe0] ss:$8 sps:$4 sm:$0xff]  }
  0x17   :  { %585 = vmatmul.mubr.msk.bf16.vlgmr.msra.gmra.mxu0 %vm79_vm0, %v42_v8  ;;  %338 = vmatprep.subr.bf16.mxu1 %v674_v10  ;;  %v698_v26 = vld [vmem:[#allocation2 + $0xd4] ss:$8 sps:$4 sm:$0xff]   ;;  %v700_v27 = vld [vmem:[#allocation2 + $0xd0] ss:$8 sps:$4 sm:$0xff]   ;;  %v701_v28 = vld [vmem:[#allocation2 + $0xc4] ss:$8 sps:$4 sm:$0xff]  }
  0x18   :  { %v703_v29 = vld [vmem:[#allocation2 + $0xc0] ss:$8 sps:$4 sm:$0xff]   ;;  %v704_v30 = vld [vmem:[#allocation2 + $0xb4] ss:$8 sps:$4 sm:$0xff]   ;;  %v706_v31 = vld [vmem:[#allocation2 + $0xb0] ss:$8 sps:$4 sm:$0xff]  }
  0x19   :  { %v707_v32 = vld [vmem:[#allocation2 + $0xa4] ss:$8 sps:$4 sm:$0xff]   ;;  %v709_v33 = vld [vmem:[#allocation2 + $0xa0] ss:$8 sps:$4 sm:$0xff]   ;;  %v710_v34 = vld [vmem:[#allocation2 + $0x94] ss:$8 sps:$4 sm:$0xff]  }
  0x1a   :  { %339 = vmatpush1.bf16.msra.mxu1 %v676_v11  ;;  %v712_v35 = vld [vmem:[#allocation2 + $0x90] ss:$8 sps:$4 sm:$0xff]   ;;  %v713_v36 = vld [vmem:[#allocation2 + $0x84] ss:$8 sps:$4 sm:$0xff]   ;;  %v715_v37 = vld [vmem:[#allocation2 + $0x80] ss:$8 sps:$4 sm:$0xff]  }
  0x1b   :  { %340 = vmatprep.subr.bf16.mxu1 %v677_v12  ;;  %v716_v38 = vld [vmem:[%s908_s5 + $0x78] sm:$0xff]   ;;  %v718_v40 = vld [vmem:[%s908_s5 + $0x70] sm:$0xff]   ;;  %v720_v42 = vld [vmem:[%s908_s5 + $0x68] sm:$0xff]   ;;  %v50_v49 = vshrl.u32 %v49_v48, 7  ;;  %s784_s24 = smov [#allocation5]  }
  0x1c   :  { %v717_v39 = vld [vmem:[%s908_s5 + $0x38] sm:$0xff]   ;;  %635 = vmatprep.subr.bf16.mxu0 %v716_v38  ;;  %v719_v41 = vld [vmem:[%s908_s5 + $0x30] sm:$0xff]   ;;  %v721_v43 = vld [vmem:[%s908_s5 + $0x28] sm:$0xff]   ;;  %s572_s25 = sshll.u32 %s784_s24, 4  ;;  %s573_s25 = int_to_ptr.vmem [resolvable:$true] %s572_s25 }
  0x1d   :  { %636 = vmatpush3.bf16.msra.mxu0 %v717_v39  ;;  %v722_v44 = vld [vmem:[%s908_s5 + $0x60] sm:$0xff]   ;;  %v724_v46 = vld [vmem:[%s908_s5 + $0x58] sm:$0xff]   ;;  %v51_v50 = vsub.s32 0, %v50_v49  ;;  %v55_v52 = vsub.s32 1, %v50_v49  ;;  %v726_v3 = vld [vmem:[%s908_s5 + $0x50] sm:$0xff]   ;;  %p761_p6 = scmp.lt.s32.totalorder %s573_s25, %s573_s25 }
  0x1e   :  { %341 = vmatpush1.bf16.msra.mxu1 %v679_v13  ;;  %637 = vmatprep.subr.bf16.mxu0 %v718_v40  ;;  %v723_v45 = vld [vmem:[%s908_s5 + $0x20] sm:$0xff]   ;;  %v725_v47 = vld [vmem:[%s908_s5 + $0x18] sm:$0xff]   ;;  %v727_v4 = vld [vmem:[%s908_s5 + $0x10] sm:$0xff]  }
  0x1f   :  { %342 = vmatprep.subr.bf16.mxu1 %v680_v14  ;;  %v47_v51 = vld [vmem:[%s905_s2] sm:$0x3]  ;;  %v728_v5 = vld [vmem:[%s908_s5 + $0x48] sm:$0xff]  }
  0x20   :  { %v52_v53 = vrot.slane %v47_v51, %v51_v50  ;;  %v56_v54 = vrot.slane %v47_v51, %v55_v52  ;;  %v729_v6 = vld [vmem:[%s908_s5 + $0x8] sm:$0xff]   ;;  %v730_v7 = vld [vmem:[%s908_s5 + $0x40] sm:$0xff]  }
  0x21   :  { %638 = vmatpush3.bf16.msra.mxu0 %v719_v41  ;;  %v731_v8 = vld [vmem:[%s908_s5] sm:$0xff]  }
  0x22   :  { %343 = vmatpush1.bf16.msra.mxu1 %v682_v15  ;;  %639 = vmatprep.subr.bf16.mxu0 %v720_v42  ;;  %v162_v9 = vld [vmem:[%s907_s4] sm:$0x3] }
  0x23   :  { %344 = vmatprep.subr.bf16.mxu1 %v683_v16  ;;  %v167_v10 = vrot.slane %v162_v9, %v51_v50  ;;  %v171_v11 = vrot.slane %v162_v9, %v55_v52 }
  0x25   :  { %640 = vmatpush3.bf16.msra.mxu0 %v721_v43 }
  0x26   :  { %345 = vmatpush1.bf16.msra.mxu1 %v685_v17  ;;  %641 = vmatprep.subr.bf16.mxu0 %v722_v44 }
  0x27   :  { %346 = vmatprep.subr.bf16.mxu1 %v686_v18 }
  0x29   :  { %642 = vmatpush3.bf16.msra.mxu0 %v723_v45 }
  0x2a   :  { %347 = vmatpush1.bf16.msra.mxu1 %v688_v19  ;;  %643 = vmatprep.subr.bf16.mxu0 %v724_v46 }
  0x2b   :  { %348 = vmatprep.subr.bf16.mxu1 %v689_v20 }
  0x2d   :  { %644 = vmatpush3.bf16.msra.mxu0 %v725_v47 }
  0x2e   :  { %349 = vmatpush1.bf16.msra.mxu1 %v691_v21  ;;  %645 = vmatprep.subr.bf16.mxu0 %v726_v3 }
  0x2f   :  { %350 = vmatprep.subr.bf16.mxu1 %v692_v22 }
  0x31   :  { %646 = vmatpush3.bf16.msra.mxu0 %v727_v4 }
  0x32   :  { %351 = vmatpush2.bf16.msra.mxu1 %v694_v23  ;;  %647 = vmatprep.subr.bf16.mxu0 %v728_v5 }
  0x33   :  { %352 = vmatprep.subr.bf16.mxu1 %v695_v24 }
  0x35   :  { %648 = vmatpush3.bf16.msra.mxu0 %v729_v6 }
  0x36   :  { %353 = vmatpush2.bf16.msra.mxu1 %v697_v25  ;;  %649 = vmatprep.subr.bf16.mxu0 %v730_v7 }
  0x37   :  { %354 = vmatprep.subr.bf16.mxu1 %v698_v26  ;;  %v618_v26 = vld [vmem:[%s909_s6] ss:$0 sm:$0xff]  ;;  %s756_s6 = scalar_lea.vmem %s573_s25, 128 }
  0x38   :  { %p757_p5 = scmp.ne.s32.totalorder %s573_s25, %s756_s6  ;;  %p762_p7 = scmp.lt.s32.totalorder %s756_s6, %s756_s6 }
  0x39   :  { %650 = vmatpush3.bf16.msra.mxu0 %v731_v8 }
  0x3a   :  { %355 = vmatpush2.bf16.msra.mxu1 %v700_v27  ;;  %p763_p8 = por %p762_p7, %p761_p6 }
  0x3b   :  { %356 = vmatprep.subr.bf16.mxu1 %v701_v28 }
  0x3c   :  { %p764_p9 = pnand %p763_p8, %p757_p5 }
  0x3e   :  { %357 = vmatpush2.bf16.msra.mxu1 %v703_v29 }
  0x3f   :  { %358 = vmatprep.subr.bf16.mxu1 %v704_v30 }
  0x42   :  { %359 = vmatpush2.bf16.msra.mxu1 %v706_v31 }
  0x43   :  { %360 = vmatprep.subr.bf16.mxu1 %v707_v32 }
  0x46   :  { %361 = vmatpush2.bf16.msra.mxu1 %v709_v33 }
  0x47   :  { %362 = vmatprep.subr.bf16.mxu1 %v710_v34 }
  0x4a   :  { %363 = vmatpush2.bf16.msra.mxu1 %v712_v35 }
  0x4b   :  { %364 = vmatprep.subr.bf16.mxu1 %v713_v36 }
  0x4e   :  { %365 = vmatpush2.bf16.msra.mxu1 %v715_v37 }
  0xd7   :  { %v117_v55 = vpop.f32.mrf.mxu0 }
  0xd8   :  { %v118_v56 = vadd.f32 %v117_v55, %v52_v53 }
  0xd9   :  { %v119_v57 = vpop.f32.mrf.mxu0 }
  0xda   :  { %v124_v58 = vmul.f32 0.01, %v118_v56  ;;  %v120_v59 = vadd.f32 %v119_v57, %v56_v54 }
  0xdb   :  { %v121_v60 = vpop.f32.mrf.mxu0 }
  0xdc   :  { %v125_v61 = vmul.f32 0.01, %v120_v59  ;;  %v126_v62 = vmax.f32 %v118_v56, %v124_v58 }
  0xdd   :  { %v122_v63 = vpop.f32.mrf.mxu0 }
  0xde   :  { %v127_v0 = vmax.f32 %v120_v59, %v125_v61  ;;  %v128_v2 = vpack.c.bf16 %v126_v62, %v126_v62 }
  0xe0   :  { %v129_v1 = vpack.c.bf16 %v127_v0, %v127_v0 }
  0xe2   :  { %366 = vmatprep.mubr.bf16.mxu1 %v129_v1 }
  0xe3   :  { %367 = vmatmul.mubr.bf16.vlgmr.msra.gmra.mxu1 %v128_v2 }
 0x1a3   :  { %v368_v12 = vpop.f32.mrf.mxu1 }
 0x1a4   :  { %v369_v13 = vadd.f32 %v368_v12, %v167_v10 }
 0x1a5   :  { %v370_v14 = vpop.f32.mrf.mxu1 }
 0x1a6   :  { %v375_v15 = vmul.f32 0.01, %v369_v13  ;;  %v371_v16 = vadd.f32 %v370_v14, %v171_v11 }
 0x1a7   :  { %v372_v17 = vpop.f32.mrf.mxu1 }
 0x1a8   :  { %v376_v18 = vmul.f32 0.01, %v371_v16  ;;  %v377_v19 = vmax.f32 %v369_v13, %v375_v15 }
 0x1a9   :  { %v373_v20 = vpop.f32.mrf.mxu1 }
 0x1aa   :  { %v378_v21 = vmax.f32 %v371_v16, %v376_v18  ;;  %v379_v23 = vpack.c.bf16 %v377_v19, %v377_v19 }
 0x1ac   :  { %v380_v22 = vpack.c.bf16 %v378_v21, %v378_v21 }
 0x1ae   :  { %548 = vmatprep.mubr.bf16.mxu0 %v380_v22 }
 0x1af   :  { %549 = vmatmul.mubr.bf16.vlgmr.msra.gmra.mxu0 %v379_v23 }
 0x26f   :  { %v651_v24 = vpop.f32.mrf.mxu0 }
 0x271   :  { %v652_v25 = vpop.f32.mrf.mxu0 }
 0x272   :  { %v653_v27 = vadd.f32 %v652_v25, %v651_v24 }
 0x273   :  { %v654_v28 = vpop.f32.mrf.mxu0 }
 0x274   :  { %v551_v29 = vadd.f32 %v653_v27, %v618_v26 }
 0x275   :  { %v655_v30 = vpop.f32.mrf.mxu0 }
 0x276   :  { %556 = vmax.xlane.f32.xlu0 %v551_v29 }
 0x2ff   :  { %v557_v31 = vpop.xlane.xlu0 %556 }
 0x300   :  { %v558_v32 = vsub.f32 %v551_v29, %v557_v31 }
 0x302   :  { %v559_v33 = vmul.f32 1.442695, %v558_v32 }
 0x304   :  { %732 = vpow2.f32 %v559_v33 }
 0x311   :  { %v733_v34 = vpop.eup %732 }
 0x312   :  { %561 = vadd.xlane.f32.xlu0 %v733_v34 }
 0x39b   :  { %v562_v35 = vpop.xlane.xlu0 %561 }
 0x39c   :  { %734 = vrcp.f32 %v562_v35 }
 0x3a9   :  { %v735_v36 = vpop.eup %734 }
 0x3aa   :  { %v564_v37 = vmul.f32 %v735_v36, %v733_v34 }
 0x3ac   :  { %565 = vst [vmem:[#allocation5] sm:$0xff] %v564_v37 }
 0x3ad   :  { %767 = shalt.err (!%p764_p9)
}
 0x3ae   :  { %575 = dma.vmem_to_hbm [thread:$0]  %s573_s25, 128, %s910_s7, [#allocation4]  }
 0x3af   :  { %778 = dma.done.wait [#allocation4], 128  }
 0x3b0   :  { %779 = vsyncadd [#allocation4], 4294967168 }
 0x3b1   :  { %579 = vsyncpa [#allocation3], 1 }
 0x3b2   :  { %580 = vsyncpa [#allocation4], 1 }

</bundles_post_ra>
